<compile_context>
chip_gen: v7x
topology: tpu7x:2x2x1
jax: 0.10.0
libtpu: 0.0.40
codegen_flags: <defaults>
</compile_context>

<pallas_src>
import functools

import jax
import jax.numpy as jnp
from jax.experimental import pallas as pl
from jax.experimental.pallas import tpu as pltpu


_LANE = 128          # vreg lane width
_MXU = 256           # MXU contraction width on v6e/v7x (multiple of v5e's 128)
_VOCAB_CHUNK = 512   # max one-hot chunk width per MXU matmul
# TODO(synk): make this threshold chip-aware (lower on v5e, whose MXU is ~4.7x
# weaker, so the O(N*V*D) one-hot FLOPs bind at a much smaller V).
_ONEHOT_MAX_VOCAB = 8192


def _round_up(a, b):
    return ((a + b - 1) // b) * b


def _vmem_budget_bytes():
    try:
        cap = int(pltpu.get_tpu_info().vmem_capacity_bytes)
    except Exception:
        cap = 64 << 20  # conservative: v7x has 64 MiB per TensorCore
    return int(cap * 0.85)


def _embed_onehot_kernel(idx_ref, w_hbm_ref, o_ref, w_vmem, acc_ref, copy_sem,
                         *, v_chunk):
    # idx_ref  : (T, 1)       int32 index block (VMEM)
    # w_hbm_ref: (V_pad, D_pad) table, memory_space=ANY (HBM)
    # o_ref    : (T, D_pad)   output tile
    # w_vmem   : (V_pad, D_pad) VMEM scratch, persists across grid steps
    # acc_ref  : (T, D_pad)   f32 accumulator scratch
    # copy_sem : DMA semaphore for the one-shot table copy

    # Copy the table into VMEM exactly once (scratch persists across the
    # sequential grid).  The token axis is "arbitrary" so a megacore split
    # can never skip step 0 on one core.
    @pl.when(pl.program_id(0) == 0)
    def _():
        cp = pltpu.make_async_copy(w_hbm_ref, w_vmem, copy_sem)
        cp.start()
        cp.wait()

    idx = idx_ref[...]                                   # (T, 1) int32
    t = idx.shape[0]
    n_chunks = w_vmem.shape[0] // v_chunk

    acc_ref[...] = jnp.zeros_like(acc_ref)

    def body(c, carry):
        base = pl.multiple_of(c * v_chunk, v_chunk)
        w_chunk = w_vmem[pl.ds(base, v_chunk), :]        # (Vc, D_pad)
        lane_ids = jax.lax.broadcasted_iota(jnp.int32, (t, v_chunk), 1)
        onehot = (lane_ids + c * v_chunk == idx).astype(w_chunk.dtype)
        acc_ref[...] += jnp.dot(onehot, w_chunk,
                                preferred_element_type=jnp.float32)
        return carry

    jax.lax.fori_loop(0, n_chunks, body, 0, unroll=(n_chunks <= 4))
    o_ref[...] = acc_ref[...].astype(o_ref.dtype)


def _embed_gather_kernel(idx_sref, w_row_ref, o_ref):
    # idx_sref: (N,) int32 scalar-prefetch indices (SMEM) -- consumed by the
    #           index_maps only.
    del idx_sref
    o_ref[...] = w_row_ref[...]


def custom_embedding(weight, x, *, block_tokens=512, force_gather=False):
    """Pallas equivalent of `weight[x]` (torch fancy-indexing embedding)."""
    num_embeddings, embedding_dim = weight.shape

    idx = x.reshape(-1).astype(jnp.int32)
    n_tokens = int(idx.shape[0])
    if n_tokens == 0:
        return jnp.zeros(x.shape + (embedding_dim,), weight.dtype)

    # torch tensor indexing wraps negative indices.
    idx = jnp.where(idx < 0, idx + num_embeddings, idx)

    itemsize = weight.dtype.itemsize
    d_pad = _round_up(embedding_dim, _LANE)       # lane-dense output rows
    vmem_budget = _vmem_budget_bytes()

    # ---- one-hot path sizing --------------------------------------------
    if num_embeddings <= _VOCAB_CHUNK:
        v_chunk = _round_up(num_embeddings, _MXU)
        v_pad = v_chunk
    else:
        v_chunk = _VOCAB_CHUNK
        v_pad = _round_up(num_embeddings, _VOCAB_CHUNK)

    t = min(_round_up(block_tokens, 8), _round_up(n_tokens, 8))
    n_pad = _round_up(n_tokens, t)

    vmem_need = (
        v_pad * d_pad * itemsize          # resident table (single-buffered)
        + 2 * t * d_pad * itemsize        # output double buffer
        + 2 * t * _LANE * 4               # (T,1) index double buffer (lane-padded)
        + t * d_pad * 4                   # f32 accumulator scratch
        + 3 * t * v_chunk * 4             # one-hot iota/compare/cast temporaries
    )

    use_onehot = (not force_gather
                  and vmem_need <= vmem_budget
                  and v_pad <= _ONEHOT_MAX_VOCAB)

    if use_onehot:
        # Zero-pad the table; pad the token axis with index 0 (valid row,
        # sliced off below).  Out-of-range indices one-hot to all-zero rows.
        w_pad = jnp.pad(weight, ((0, v_pad - num_embeddings),
                                 (0, d_pad - embedding_dim)))
        idx_col = jnp.pad(idx, (0, n_pad - n_tokens)).reshape(n_pad, 1)

        cost = pl.CostEstimate(
            flops=2 * n_pad * v_pad * d_pad,
            transcendentals=0,
            bytes_accessed=(v_pad * d_pad * itemsize
                            + n_pad * d_pad * itemsize + n_pad * 4),
        )

        out_pad = pl.pallas_call(
            functools.partial(_embed_onehot_kernel, v_chunk=v_chunk),
            out_shape=jax.ShapeDtypeStruct((n_pad, d_pad), weight.dtype),
            grid_spec=pltpu.PrefetchScalarGridSpec(
                num_scalar_prefetch=0,
                grid=(n_pad // t,),
                in_specs=[
                    pl.BlockSpec((t, 1), lambda i: (i, 0)),
                    pl.BlockSpec(memory_space=pl.ANY),   # table stays in HBM
                ],
                out_specs=pl.BlockSpec((t, d_pad), lambda i: (i, 0)),
                scratch_shapes=[
                    pltpu.VMEM((v_pad, d_pad), weight.dtype),  # resident table
                    pltpu.VMEM((t, d_pad), jnp.float32),       # f32 accumulator
                    pltpu.SemaphoreType.DMA(()),
                ],
            ),
            compiler_params=pltpu.CompilerParams(
                # "arbitrary": the one-shot table DMA is gated on
                # program_id == 0 and must not be skipped by a megacore split.
                dimension_semantics=("arbitrary",),
                vmem_limit_bytes=int(min(max(vmem_need + (4 << 20), 16 << 20),
                                         vmem_budget)),
            ),
            cost_estimate=cost,
        )(idx_col, w_pad)

        out = out_pad[:n_tokens, :embedding_dim]
        return out.reshape(x.shape + (embedding_dim,))

    # ---- fallback: scalar-prefetch row gather ----------------------------
    # O(N*D) HBM traffic, no MXU work; the right regime when the table does
    # not fit VMEM or when n_tokens << vocab.
    # TODO(synk): batch G rows per grid step with a manual double-buffered
    # make_async_copy gather to amortize the ~0.35us/step overhead.
    idx_safe = jnp.clip(idx, 0, num_embeddings - 1)
    w3 = jnp.pad(weight, ((0, 0), (0, d_pad - embedding_dim)))
    w3 = w3.reshape(num_embeddings, 1, d_pad)

    cost = pl.CostEstimate(
        flops=0,
        transcendentals=0,
        bytes_accessed=2 * n_tokens * d_pad * itemsize + n_tokens * 4,
    )

    out3 = pl.pallas_call(
        _embed_gather_kernel,
        out_shape=jax.ShapeDtypeStruct((n_tokens, 1, d_pad), weight.dtype),
        grid_spec=pltpu.PrefetchScalarGridSpec(
            num_scalar_prefetch=1,
            grid=(n_tokens,),
            in_specs=[
                # Block size 1 along the vocab axis -> block index == row
                # index; the row to fetch comes from the prefetched indices.
                pl.BlockSpec((1, 1, d_pad),
                             lambda i, idx_ref: (idx_ref[i], 0, 0)),
            ],
            out_specs=pl.BlockSpec((1, 1, d_pad),
                                   lambda i, idx_ref: (i, 0, 0)),
        ),
        compiler_params=pltpu.CompilerParams(
            dimension_semantics=("arbitrary",),
            vmem_limit_bytes=int(min(32 << 20, vmem_budget)),
        ),
        cost_estimate=cost,
    )(idx_safe, w3)

    out = out3.reshape(n_tokens, d_pad)[:, :embedding_dim]
    return out.reshape(x.shape + (embedding_dim,))


if __name__ == "__main__":
    key = jax.random.PRNGKey(0)
    k_w, k_x = jax.random.split(key)

    num_embeddings = 64
    embedding_dim = 128          # lane-aligned embedding width
    batch, seq = 2, 8

    # deterministic parameter init, matching 0.02 * randn((V, D))
    weight = 0.02 * jax.random.normal(
        k_w, (num_embeddings, embedding_dim), dtype=jnp.float32)
    x = jax.random.randint(
        k_x, (batch, seq), 0, num_embeddings, dtype=jnp.int32)

    ref = weight[x]              # plain JAX fancy-indexing == torch weight[x]

    # Path A: one-hot MXU path (table fits VMEM).
    y = custom_embedding(weight, x)
    jax.block_until_ready(y)
    assert y.shape == (batch, seq, embedding_dim), y.shape
    assert y.dtype == weight.dtype
    assert jnp.allclose(y, ref, atol=1e-6), "one-hot path mismatch vs reference"

    # Path B: scalar-prefetch row-gather fallback (forced, same data).
    y2 = custom_embedding(weight, x, force_gather=True)
    jax.block_until_ready(y2)
    assert y2.shape == (batch, seq, embedding_dim), y2.shape
    assert jnp.allclose(y2, ref, atol=1e-6), "gather path mismatch vs reference"

    print("KERNEL_OK")
</pallas_src>

<mosaic_0001>
module attributes {stable_mosaic.version = 11 : i64} {
  func.func @_embed_onehot_kernel(%arg0: i32, %arg1: memref<16x1xi32, #tpu.memory_space<vmem>>, %arg2: memref<256x128xf32, #tpu.memory_space<any>>, %arg3: memref<16x128xf32, #tpu.memory_space<vmem>>, %arg4: memref<256x128xf32, #tpu.memory_space<vmem>>, %arg5: memref<16x128xf32, #tpu.memory_space<vmem>>, %arg6: memref<!tpu.dma_semaphore, #tpu.memory_space<semaphore_mem>>) attributes {dimension_semantics = [#tpu.dimension_semantics<arbitrary>], iteration_bounds = array<i64: 1>, scalar_prefetch = 0 : i64, scratch_operands = 3 : i64, tpu.core_type = #tpu.core_type<tc>, window_params = [{transform_indices = @transform_0, window_bounds = array<i64: 16, 1>}, {}, {transform_indices = @transform_2, window_bounds = array<i64: 16, 128>}]} {
    %c0_i32 = arith.constant 0 : i32
    %0 = arith.cmpi eq, %arg0, %c0_i32 : i32
    %1 = arith.extui %0 : i1 to i32
    %c0_i32_0 = arith.constant 0 : i32
    %2 = arith.cmpi ne, %1, %c0_i32_0 : i32
    scf.if %2 {
      tpu.enqueue_dma source(%arg2 : memref<256x128xf32, #tpu.memory_space<any>>) target(%arg4 : memref<256x128xf32, #tpu.memory_space<vmem>>) target_semaphore(%arg6 : memref<!tpu.dma_semaphore, #tpu.memory_space<semaphore_mem>>)
      tpu.wait_dma2 semaphore(%arg6 : memref<!tpu.dma_semaphore, #tpu.memory_space<semaphore_mem>>) src(%arg2 : memref<256x128xf32, #tpu.memory_space<any>>) dst(%arg4 : memref<256x128xf32, #tpu.memory_space<vmem>>)
    } else {
    }
    %c0 = arith.constant 0 : index
    %c0_1 = arith.constant 0 : index
    %3 = vector.load %arg1[%c0, %c0_1] : memref<16x1xi32, #tpu.memory_space<vmem>>, vector<16x1xi32>
    %cst = arith.constant 0.000000e+00 : f32
    %4 = vector.broadcast %cst : f32 to vector<16x128xf32>
    %c0_2 = arith.constant 0 : index
    %c0_3 = arith.constant 0 : index
    %5 = vector.load %arg5[%c0_2, %c0_3] : memref<16x128xf32, #tpu.memory_space<vmem>>, vector<16x128xf32>
    tpu.vector_store %arg5[%c0_2, %c0_3], %4 {strides = array<i32>} : memref<16x128xf32, #tpu.memory_space<vmem>>, vector<16x128xf32>,
    %c0_i32_4 = arith.constant 0 : i32
    %c256_i32 = arith.constant 256 : i32
    %6 = arith.muli %c0_i32_4, %c256_i32 : i32
    %7 = tpu.assume_multiple %6, 256 : i32
    %8 = arith.index_cast %7 : i32 to index
    %c0_5 = arith.constant 0 : index
    %9 = vector.load %arg4[%8, %c0_5] : memref<256x128xf32, #tpu.memory_space<vmem>>, vector<256x128xf32>
    %10 = tpu.iota {dimensions = array<i32: 1>} : vector<16x256xi32>
    %c256_i32_6 = arith.constant 256 : i32
    %11 = arith.muli %c0_i32_4, %c256_i32_6 : i32
    %12 = vector.broadcast %11 : i32 to vector<16x256xi32>
    %13 = arith.addi %10, %12 : vector<16x256xi32>
    %14 = vector.broadcast %3 : vector<16x1xi32> to vector<16x256xi32>
    %15 = arith.cmpi eq, %13, %14 : vector<16x256xi32>
    %16 = arith.extui %15 : vector<16x256xi1> to vector<16x256xi32>
    %17 = arith.sitofp %16 : vector<16x256xi32> to vector<16x256xf32>
    %c0_7 = arith.constant 0 : index
    %c0_8 = arith.constant 0 : index
    %18 = vector.load %arg5[%c0_7, %c0_8] : memref<16x128xf32, #tpu.memory_space<vmem>>, vector<16x128xf32>
    %cst_9 = arith.constant dense<0.000000e+00> : vector<16x128xf32>
    %19 = tpu.matmul %17, %9, %cst_9 {dimension_numbers = #tpu.dot_dimension_numbers<[1], [0], [0], [1], [0, 0, 1, 1], [], []>} : vector<16x256xf32>, vector<256x128xf32>, vector<16x128xf32> -> vector<16x128xf32>
    %20 = arith.addf %18, %19 : vector<16x128xf32>
    %c0_10 = arith.constant 0 : index
    %c0_11 = arith.constant 0 : index
    %21 = vector.load %arg5[%c0_10, %c0_11] : memref<16x128xf32, #tpu.memory_space<vmem>>, vector<16x128xf32>
    tpu.vector_store %arg5[%c0_10, %c0_11], %20 {strides = array<i32>} : memref<16x128xf32, #tpu.memory_space<vmem>>, vector<16x128xf32>,
    %c1_i32 = arith.constant 1 : i32
    %c0_12 = arith.constant 0 : index
    %c0_13 = arith.constant 0 : index
    %22 = vector.load %arg5[%c0_12, %c0_13] : memref<16x128xf32, #tpu.memory_space<vmem>>, vector<16x128xf32>
    %c0_14 = arith.constant 0 : index
    %c0_15 = arith.constant 0 : index
    %23 = vector.load %arg3[%c0_14, %c0_15] : memref<16x128xf32, #tpu.memory_space<vmem>>, vector<16x128xf32>
    tpu.vector_store %arg3[%c0_14, %c0_15], %22 {strides = array<i32>} : memref<16x128xf32, #tpu.memory_space<vmem>>, vector<16x128xf32>,
    return
  }
  func.func @transform_0(%arg0: i32) -> (i32, i32) {
    %c0_i32 = arith.constant 0 : i32
    %c0_i32_0 = arith.constant 0 : i32
    return %arg0, %c0_i32 : i32, i32
  }
  func.func @transform_2(%arg0: i32) -> (i32, i32) {
    %c0_i32 = arith.constant 0 : i32
    %c0_i32_0 = arith.constant 0 : i32
    return %arg0, %c0_i32 : i32, i32
  }
}

</mosaic_0001>

<bundles_post_ra>
// kernel: tpu_custom_call.1
= control target key start
LH: loop header
LB: loop body
LE: loop exit
PB: predicated region body
PF: predicated region fallthrough
CT: control target
= control target key end

     0   :  { %7 = vsyncpa [#allocation6], 0  ;;  %s342_s9 = smov [#allocation2]   ;;  %s393_s0 = inlined_call_operand.vmem [shape: s32[16,1], index: 0, kind: input, shape index: {}]   ;;  %s394_s1 = inlined_call_operand.hbm [shape: f32[256,128], index: 1, kind: input, shape index: {}]   ;;  %s395_s2 = inlined_call_operand.hbm [shape: f32[16,128], index: 2, kind: output, shape index: {}]  }
   0x1   :  { %s21_s10 = sshll.u32 %s342_s9, 4  ;;  %s294_s13 = scalar_lea.hbm %s394_s1, 4096  ;;  %s22_s10 = int_to_ptr.vmem [resolvable:$true] %s21_s10 }
   0x2   :  { %p295_p0 = scmp.ne.s32.totalorder %s394_s1, %s294_s13  ;;  %p298_p1 = scmp.lt.u32.totalorder %s294_s13, %s394_s1 }
   0x4   :  { %p300_p2 = pnand %p298_p1, %p295_p0 }
   0x6   :  { %303 = shalt.err (!%p300_p2)  }
   0x7   :  { %s304_s18 = scalar_lea.vmem %s22_s10, 4096  ;;  %p309_p4 = scmp.lt.s32.totalorder %s22_s10, %s22_s10 }
   0x8   :  { %p305_p3 = scmp.ne.s32.totalorder %s22_s10, %s304_s18  ;;  %p310_p5 = scmp.lt.s32.totalorder %s304_s18, %s304_s18 }
   0xa   :  { %p311_p6 = por %p310_p5, %p309_p4 }
   0xc   :  { %p312_p7 = pnand %p311_p6, %p305_p3 }
   0xe   :  { %315 = shalt.err (!%p312_p7)  }
   0xf   :  { %24 = dma.hbm_to_vmem [thread:$0]  %s394_s1, 4096, %s22_s10, [#allocation4] }
  0x10   :  { %338 = dma.done.wait [#allocation4], 4096 }
  0x11   :  { %339 = vsyncadd [#allocation4], 4294963200  ;;  %v343_v0 = vmov 0   ;;  %v28_v1 = vld [vmem:[%s393_s0] sm:$0xff]  ;;  %v29_v2 = vld [vmem:[%s393_s0 + $0x8] sm:$0xff]  ;;  %v64_v51 = vlaneseq  ;;  %v344_v55 = vmov 1.0  }
  0x12   :  { %293 = vset.pattern.permute.xlu0 %v343_v0  ;;  %v48_v3 = vld [vmem:[#allocation2 + $0x80] sm:$0xff]  ;;  %v49_v4 = vld [vmem:[#allocation2 + $0x88] sm:$0xff]  ;;  %v50_v9 = vld [vmem:[#allocation2 + $0x90] sm:$0xff]  ;;  %s345_s0 = smov [#allocation5]  }
  0x13   :  { %68 = vperm.xlu0 %293, %v28_v1   ;;  %v32_v5 = vld [vmem:[#allocation2] sm:$0xff]  ;;  %v33_v6 = vld [vmem:[#allocation2 + $0x8] sm:$0xff]  ;;  %v239_v7 = vpack.c.bf16 %v49_v4, %v48_v3  ;;  %v51_v10 = vld [vmem:[#allocation2 + $0x98] sm:$0xff]  ;;  %v65_v52 = vand.u32 127, %v64_v51  ;;  %s175_s1 = sshll.u32 %s345_s0, 4  ;;  %s176_s1 = int_to_ptr.vmem [resolvable:$true] %s175_s1 }
  0x14   :  { %v241_v8 = vpack.c.bf16 %v33_v6, %v32_v5  ;;  %v34_v11 = vld [vmem:[#allocation2 + $0x10] sm:$0xff]  ;;  %v243_v12 = vpack.c.bf16 %v51_v10, %v50_v9  ;;  %v35_v13 = vld [vmem:[#allocation2 + $0x18] sm:$0xff]  ;;  %v52_v14 = vld [vmem:[#allocation2 + $0xa0] sm:$0xff]  ;;  %s316_s25 = scalar_lea.vmem %s176_s1, 256  ;;  %p321_p9 = scmp.lt.s32.totalorder %s176_s1, %s176_s1 }
  0x15   :  { %v53_v15 = vld [vmem:[#allocation2 + $0xa8] sm:$0xff]  ;;  %240 = vmatprep.subr.bf16.mxu0 %v239_v7  ;;  %271 = vmatprep.subr.bf16.mxu1 %v239_v7  ;;  %v245_v16 = vpack.c.bf16 %v35_v13, %v34_v11  ;;  %v36_v18 = vld [vmem:[#allocation2 + $0x20] sm:$0xff]  ;;  %v54_v20 = vld [vmem:[#allocation2 + $0xb0] sm:$0xff]  ;;  %v66_v53 = vadd.s32 128, %v65_v52  ;;  %p317_p8 = scmp.ne.s32.totalorder %s176_s1, %s316_s25  ;;  %p322_p10 = scmp.lt.s32.totalorder %s316_s25, %s316_s25 }
  0x16   :  { %242 = vmatpush3.bf16.msra.mxu0 %v241_v8  ;;  %279 = vmatpush3.bf16.msra.mxu1 %v241_v8  ;;  %v247_v17 = vpack.c.bf16 %v53_v15, %v52_v14  ;;  %v37_v19 = vld [vmem:[#allocation2 + $0x28] sm:$0xff]  ;;  %v55_v21 = vld [vmem:[#allocation2 + $0xb8] sm:$0xff]  ;;  %v38_v24 = vld [vmem:[#allocation2 + $0x30] sm:$0xff] }
  0x17   :  { %71 = vperm.xlu0 %293, %v29_v2   ;;  %244 = vmatprep.subr.bf16.mxu0 %v243_v12  ;;  %v249_v22 = vpack.c.bf16 %v37_v19, %v36_v18  ;;  %v251_v23 = vpack.c.bf16 %v55_v21, %v54_v20  ;;  %v39_v25 = vld [vmem:[#allocation2 + $0x38] sm:$0xff]  ;;  %v56_v26 = vld [vmem:[#allocation2 + $0xc0] sm:$0xff]  ;;  %v57_v27 = vld [vmem:[#allocation2 + $0xc8] sm:$0xff]  ;;  %p323_p11 = por %p322_p10, %p321_p9 }
  0x18   :  { %272 = vmatprep.subr.bf16.mxu1 %v243_v12  ;;  %v253_v28 = vpack.c.bf16 %v39_v25, %v38_v24  ;;  %v255_v29 = vpack.c.bf16 %v57_v27, %v56_v26  ;;  %v40_v30 = vld [vmem:[#allocation2 + $0x40] sm:$0xff]  ;;  %v41_v31 = vld [vmem:[#allocation2 + $0x48] sm:$0xff]  ;;  %v58_v32 = vld [vmem:[#allocation2 + $0xd0] sm:$0xff] }
  0x19   :  { %v59_v33 = vld [vmem:[#allocation2 + $0xd8] sm:$0xff]  ;;  %v257_v34 = vpack.c.bf16 %v41_v31, %v40_v30  ;;  %v42_v36 = vld [vmem:[#allocation2 + $0x50] sm:$0xff]  ;;  %v60_v38 = vld [vmem:[#allocation2 + $0xe0] sm:$0xff]  ;;  %p324_p12 = pnand %p323_p11, %p317_p8 }
  0x1a   :  { %246 = vmatpush3.bf16.msra.mxu0 %v245_v16  ;;  %280 = vmatpush3.bf16.msra.mxu1 %v245_v16  ;;  %v259_v35 = vpack.c.bf16 %v59_v33, %v58_v32  ;;  %v43_v37 = vld [vmem:[#allocation2 + $0x58] sm:$0xff]  ;;  %v61_v39 = vld [vmem:[#allocation2 + $0xe8] sm:$0xff]  ;;  %v44_v42 = vld [vmem:[#allocation2 + $0x60] sm:$0xff] }
  0x1b   :  { %248 = vmatprep.subr.bf16.mxu0 %v247_v17  ;;  %273 = vmatprep.subr.bf16.mxu1 %v247_v17  ;;  %v261_v40 = vpack.c.bf16 %v43_v37, %v42_v36  ;;  %v263_v41 = vpack.c.bf16 %v61_v39, %v60_v38  ;;  %v45_v43 = vld [vmem:[#allocation2 + $0x68] sm:$0xff]  ;;  %v62_v44 = vld [vmem:[#allocation2 + $0xf0] sm:$0xff]  ;;  %v63_v45 = vld [vmem:[#allocation2 + $0xf8] sm:$0xff] }
  0x1c   :  { %v265_v46 = vpack.c.bf16 %v45_v43, %v44_v42  ;;  %v267_v47 = vpack.c.bf16 %v63_v45, %v62_v44  ;;  %v46_v48 = vld [vmem:[#allocation2 + $0x70] sm:$0xff]  ;;  %v47_v49 = vld [vmem:[#allocation2 + $0x78] sm:$0xff] }
  0x1d   :  { %v269_v50 = vpack.c.bf16 %v47_v49, %v46_v48 }
  0x1e   :  { %250 = vmatpush3.bf16.msra.mxu0 %v249_v22  ;;  %281 = vmatpush3.bf16.msra.mxu1 %v249_v22 }
  0x1f   :  { %252 = vmatprep.subr.bf16.mxu0 %v251_v23  ;;  %274 = vmatprep.subr.bf16.mxu1 %v251_v23 }
  0x22   :  { %254 = vmatpush3.bf16.msra.mxu0 %v253_v28  ;;  %282 = vmatpush3.bf16.msra.mxu1 %v253_v28 }
  0x23   :  { %256 = vmatprep.subr.bf16.mxu0 %v255_v29  ;;  %275 = vmatprep.subr.bf16.mxu1 %v255_v29 }
  0x26   :  { %258 = vmatpush3.bf16.msra.mxu0 %v257_v34  ;;  %283 = vmatpush3.bf16.msra.mxu1 %v257_v34 }
  0x27   :  { %260 = vmatprep.subr.bf16.mxu0 %v259_v35  ;;  %276 = vmatprep.subr.bf16.mxu1 %v259_v35 }
  0x2a   :  { %262 = vmatpush3.bf16.msra.mxu0 %v261_v40  ;;  %284 = vmatpush3.bf16.msra.mxu1 %v261_v40 }
  0x2b   :  { %264 = vmatprep.subr.bf16.mxu0 %v263_v41  ;;  %277 = vmatprep.subr.bf16.mxu1 %v263_v41 }
  0x2e   :  { %266 = vmatpush3.bf16.msra.mxu0 %v265_v46  ;;  %285 = vmatpush3.bf16.msra.mxu1 %v265_v46 }
  0x2f   :  { %268 = vmatprep.subr.bf16.mxu0 %v267_v47  ;;  %278 = vmatprep.subr.bf16.mxu1 %v267_v47 }
  0x32   :  { %270 = vmatpush3.bf16.msra.mxu0 %v269_v50  ;;  %286 = vmatpush3.bf16.msra.mxu1 %v269_v50 }
  0x92   :  { %v69_v54 = vpop.permute.xlu0 %68 }
  0x93   :  { %vm73_vm0 = vcmp.eq.s32.totalorder %v65_v52, %v69_v54  ;;  %vm74_vm1 = vcmp.eq.s32.totalorder %v66_v53, %v69_v54 }
  0x94   :  { %196 = vmatprep.mubr.msk.f32.mxu0 %vm74_vm1, %v344_v55 }
  0x95   :  { %197 = vmatmul.mubr.msk.f32.vlgmr.msra.gmra.mrb[0].mxu0 %vm73_vm0, %v344_v55 }
  0x96   :  { %v72_v56 = vpop.permute.xlu0 %71 }
  0x97   :  { %vm75_vm2 = vcmp.eq.s32.totalorder %v65_v52, %v72_v56  ;;  %vm76_vm3 = vcmp.eq.s32.totalorder %v66_v53, %v72_v56 }
  0x98   :  { %198 = vmatprep.mubr.msk.f32.mxu1 %vm76_vm3, %v344_v55 }
  0x99   :  { %199 = vmatmul.mubr.msk.f32.vlgmr.msra.gmra.mrb[0].mxu1 %vm75_vm2, %v344_v55 }
 0x168   :  { %v233_v57 = vpop.f32.mrb[0].mxu0 }
 0x169   :  { %v234_v58 = vpop.f32.mrb[1].mxu0 }
 0x16a   :  { %v235_v59 = vadd.f32 %v234_v58, %v233_v57 }
 0x16c   :  { %168 = vst [vmem:[#allocation5] sm:$0xff] %v235_v59  ;;  %v236_v60 = vpop.f32.mrb[0].mxu1 }
 0x16d   :  { %v237_v61 = vpop.f32.mrb[1].mxu1 }
 0x16e   :  { %v238_v62 = vadd.f32 %v237_v61, %v236_v60 }
 0x170   :  { %169 = vst [vmem:[#allocation5 + $0x8] sm:$0xff] %v238_v62 }
 0x171   :  { %327 = shalt.err (!%p324_p12)
}
 0x172   :  { %s328_s28 = scalar_lea.hbm %s395_s2, 256 }
 0x173   :  { %p329_p13 = scmp.ne.s32.totalorder %s395_s2, %s328_s28  ;;  %p332_p0 = scmp.lt.u32.totalorder %s328_s28, %s395_s2 }
 0x175   :  { %p334_p1 = pnand %p332_p0, %p329_p13 }
 0x177   :  { %337 = shalt.err (!%p334_p1)
}
 0x178   :  { %s346_s5 = smov 128   ;;  %s347_s6 = smov 8  }
 0x179   :  { %181 = dma.vmem_to_hbm [thread:$0]  %s176_s1, 256, %s395_s2, [#allocation6], %s346_s5, %s346_s5, %s347_s6  }
 0x17a   :  { %340 = dma.done.wait [#allocation6], 256  }
 0x17b   :  { %341 = vsyncadd [#allocation6], 4294967040 }
 0x17c   :  { %185 = vsyncpa [#allocation6], 1 }
 0x17d   :  { %186 = vsyncmov [#allocation4] }
 0x180   :  { %s187_s9 = vpop.sfrf %186 }
 0x181   :  { %p200_p2 = scmp.ne.s32.totalorder %s187_s9, 0 }
 0x183   :  { %191 = shalt.err (%p200_p2)  }

</bundles_post_ra>
